<compile_context>
chip_gen: v7x
topology: tpu7x:2x2x1
jax: 0.10.0
libtpu: 0.0.40
codegen_flags: <defaults>
</compile_context>

<pallas_src>
import functools

import numpy as np
import jax
import jax.numpy as jnp
from jax import lax
from jax.experimental import pallas as pl
from jax.experimental.pallas import tpu as pltpu


# --------------------------------------------------------------------------- #
# Kernel
# --------------------------------------------------------------------------- #
def _topk_select_kernel(x_ref, o_ref, *, count, largest, group, roll_like_jnp):
    """Per lane-group of size `group`, zero everything except:
         largest=True : the `count` largest-|x| entries (keep path),
         largest=False: everything except the `count` smallest-|x| (drop path).
    """
    x = x_ref[...]                                   # (R, L)
    R, L = x.shape
    a = jnp.abs(x).astype(jnp.float32)
    a = jnp.where(jnp.isnan(a), jnp.float32(jnp.inf), a)   # NaN sorts largest
    col = lax.broadcasted_iota(jnp.int32, (R, L), 1)

    if group == L:
        # ---- full-row path: native cross-lane reductions (float domain) ----
        mask = col < 0                               # all-False
        if largest:
            for _ in range(count):
                work = jnp.where(mask, -jnp.inf, a)
                m = jnp.max(work, axis=-1, keepdims=True)
                # kept lanes hold -inf < m >= 0, so they can never re-fire.
                cand = work == m
                first = jnp.min(jnp.where(cand, col, L), axis=-1, keepdims=True)
                mask = mask | (col == first)
            o_ref[...] = jnp.where(mask, x, jnp.zeros_like(x))
        else:
            for _ in range(count):
                work = jnp.where(mask, jnp.inf, a)
                m = jnp.min(work, axis=-1, keepdims=True)
                cand = (work == m) & (~mask)         # guard: all-remaining-+inf case
                first = jnp.min(jnp.where(cand, col, L), axis=-1, keepdims=True)
                mask = mask | (col == first)
            o_ref[...] = jnp.where(mask, jnp.zeros_like(x), x)
        return

    # ---- packed path: L // group logical rows per lane row -----------------
    # Work on the int32 bit pattern of |x| (order preserving for a >= 0).
    key = pltpu.bitcast(a, jnp.int32)                # in [0, 0x7f800000]
    cg = col & (group - 1)                           # lane index within group

    def greduce(v, op):
        # XOR-butterfly all-reduce within contiguous lane groups of `group`.
        s = 1
        while s < group:
            plus = pltpu.roll(v, (L - s) if roll_like_jnp else s, axis=1)   # v[j+s]
            minus = pltpu.roll(v, s if roll_like_jnp else (L - s), axis=1)  # v[j-s]
            v = op(v, jnp.where((col & s) == 0, plus, minus))               # v[j^s]
            s *= 2
        return v

    if largest:
        sentinel, sel = jnp.int32(-1), jnp.maximum          # keys >= 0 > sentinel
    else:
        sentinel, sel = jnp.int32(0x7FFFFFFF), jnp.minimum  # keys <= inf-bits < sentinel

    work = key
    for _ in range(count):
        m = greduce(work, sel)
        cand = work == m                              # sentinel lanes never match m
        first = greduce(jnp.where(cand, cg, jnp.int32(group)), jnp.minimum)
        work = jnp.where(cg == first, sentinel, work)

    selected = work == sentinel
    if largest:
        o_ref[...] = jnp.where(selected, x, jnp.zeros_like(x))
    else:
        o_ref[...] = jnp.where(selected, jnp.zeros_like(x), x)


# --------------------------------------------------------------------------- #
# Wrapper helpers
# --------------------------------------------------------------------------- #
@functools.cache
def _roll_is_jnp_like():
    """True if pltpu.roll(v, s)[j] == v[(j - s) % n] (jnp.roll convention).
    Returns None if the probe cannot run (caller falls back to the unpacked
    path)."""
    try:
        with jax.ensure_compile_time_eval():
            def probe(o_ref):
                lane = lax.broadcasted_iota(jnp.int32, (8, 128), 1)
                o_ref[...] = pltpu.roll(lane, 1, axis=1)
            out = pl.pallas_call(
                probe, out_shape=jax.ShapeDtypeStruct((8, 128), jnp.int32))()
            return bool(int(out[0, 1]) == 0)
    except Exception:
        return None


def _round_down(v, m):
    return (v // m) * m


def _tpu_budgets():
    """(tile_cap_bytes_f32_working_set, vmem_limit_bytes, min_grid_steps)."""
    kind = ""
    try:
        kind = jax.devices()[0].device_kind.lower()
    except Exception:
        pass
    if "v7" in kind or "tpu7" in kind:
        # 64 MiB VMEM per TensorCore, 2 TCs per chip -> smaller tiles, >=8 steps.
        return (2 << 20), (48 << 20), 8
    # v5e / v6e: 128 MiB physical VMEM.
    return (4 << 20), (64 << 20), 1


# --------------------------------------------------------------------------- #
# Public entry point
# --------------------------------------------------------------------------- #
def topk(x, k: int, *, row_tile: int | None = None):
    """Keep the k largest-|x| entries along the last dim, zero the rest.

    row_tile overrides the automatic row-tile size (mainly for tests/tuning).
    """
    orig_shape = x.shape
    D = orig_shape[-1]
    k = int(k)
    if k >= D:
        return x
    if k <= 0:
        return jnp.zeros_like(x)

    x2 = x.reshape(-1, D)
    N = x2.shape[0]

    inv_k = D - k
    largest = k <= inv_k
    count = k if largest else inv_k

    # Lane-dense packing for small power-of-two feature dims: put 128 // D
    # logical rows side by side on the 128 lanes (a free, row-major reshape).
    group, L, arr, n_rows = D, D, x2, N
    roll_like_jnp = True
    if D < 128 and (D & (D - 1)) == 0:
        g = 128 // D
        if N % g == 0:
            probed = _roll_is_jnp_like()
            if probed is not None:
                roll_like_jnp = probed
                L = g * D
                arr = x2.reshape(N // g, L)
                n_rows = N // g

    itemsize = jnp.dtype(x.dtype).itemsize
    sub = max(8, 32 // max(1, itemsize))             # sublane multiple per dtype
    tile_cap, vmem_lim, min_steps = _tpu_budgets()

    if row_tile is not None:
        rt = max(sub, _round_down(int(row_tile), sub))
    else:
        # The in-kernel working set is f32/int32 regardless of input dtype.
        rt = max(sub, _round_down(tile_cap // (L * 4), sub))
        # v7x: keep enough grid steps so both TensorCores stay busy.
        while min_steps > 1 and rt > sub and pl.cdiv(n_rows, rt) < min_steps:
            rt = max(sub, _round_down(rt // 2, sub))
    if rt >= n_rows:
        rt = n_rows                                  # single full-extent block

    kernel = functools.partial(
        _topk_select_kernel, count=count, largest=largest, group=group,
        roll_like_jnp=roll_like_jnp)

    out = pl.pallas_call(
        kernel,
        out_shape=jax.ShapeDtypeStruct((n_rows, L), x.dtype),
        grid_spec=pl.GridSpec(
            grid=(pl.cdiv(n_rows, rt),),
            in_specs=[pl.BlockSpec((rt, L), lambda i: (i, 0))],
            out_specs=pl.BlockSpec((rt, L), lambda i: (i, 0)),
        ),
        compiler_params=pltpu.CompilerParams(
            dimension_semantics=("parallel",),
            vmem_limit_bytes=vmem_lim,
        ),
    )(arr)

    return out.reshape(orig_shape)


# --------------------------------------------------------------------------- #
# Reference + tests
# --------------------------------------------------------------------------- #
def _ref_topk(xn: np.ndarray, k: int) -> np.ndarray:
    """Numpy reference: zero the (D - k) smallest-|x| positions per row."""
    D = xn.shape[-1]
    x2 = np.asarray(xn, dtype=np.float32).reshape(-1, D).copy()
    inv_k = D - k
    for r in range(x2.shape[0]):
        idx = np.argsort(np.abs(x2[r]), kind="stable")[:inv_k]
        x2[r, idx] = 0.0
    return x2.reshape(xn.shape)


if __name__ == "__main__":
    key = jax.random.PRNGKey(0)
    B, T, D = 2, 8, 32

    # 1) packed keep path (k <= D - k), single block.
    x1 = jax.random.normal(key, (B, T, D), dtype=jnp.float32)
    y1 = jax.block_until_ready(topk(x1, 4))
    np.testing.assert_allclose(np.asarray(y1), _ref_topk(np.asarray(x1), 4),
                               rtol=0, atol=0)

    # 2) module default k=1; row count not divisible by 128//D -> lane-sparse path.
    x2 = jax.random.normal(jax.random.fold_in(key, 1), (3, 5, D),
                           dtype=jnp.float32)
    y2 = jax.block_until_ready(topk(x2, 1))
    np.testing.assert_allclose(np.asarray(y2), _ref_topk(np.asarray(x2), 1),
                               rtol=0, atol=0)

    # 3) packed drop path (D - k < k).
    y3 = jax.block_until_ready(topk(x1, 30))
    np.testing.assert_allclose(np.asarray(y3), _ref_topk(np.asarray(x1), 30),
                               rtol=0, atol=0)

    # 4) packed path with a ragged grid (partial final block, masked store).
    x4 = jax.random.normal(jax.random.fold_in(key, 2), (4, 11, D),
                           dtype=jnp.float32)
    y4 = jax.block_until_ready(topk(x4, 1, row_tile=8))
    np.testing.assert_allclose(np.asarray(y4), _ref_topk(np.asarray(x4), 1),
                               rtol=0, atol=0)

    # 5) non-power-of-two feature dim + ragged grid (lane-sparse path).
    x5 = jax.random.normal(jax.random.fold_in(key, 3), (5, 7, 20),
                           dtype=jnp.float32)
    y5 = jax.block_until_ready(topk(x5, 3, row_tile=16))
    np.testing.assert_allclose(np.asarray(y5), _ref_topk(np.asarray(x5), 3),
                               rtol=0, atol=0)

    # 6) bf16, tie-free |x| by construction (distinct small integers per row).
    mag = jnp.argsort(jax.random.uniform(jax.random.fold_in(key, 4),
                                         (B * T, D)), axis=-1) + 1
    sgn = jnp.where(jax.random.bernoulli(jax.random.fold_in(key, 5), 0.5,
                                         (B * T, D)), 1.0, -1.0)
    x6 = (mag * sgn).astype(jnp.bfloat16).reshape(B, T, D)
    y6 = jax.block_until_ready(topk(x6, 2))
    np.testing.assert_allclose(np.asarray(y6, dtype=np.float32),
                               _ref_topk(np.asarray(x6, dtype=np.float32), 2),
                               rtol=0, atol=0)

    print("KERNEL_OK")
</pallas_src>

<mosaic_0001>
module attributes {stable_mosaic.version = 11 : i64} {
  func.func @_topk_select_kernel(%arg0: i32, %arg1: memref<16x32xf32, #tpu.memory_space<vmem>>, %arg2: memref<16x32xf32, #tpu.memory_space<vmem>>) attributes {dimension_semantics = [#tpu.dimension_semantics<parallel>], iteration_bounds = array<i64: 1>, scalar_prefetch = 0 : i64, scratch_operands = 0 : i64, tpu.core_type = #tpu.core_type<tc>, window_params = [{transform_indices = @transform_0, window_bounds = array<i64: 16, 32>}, {transform_indices = @transform_1, window_bounds = array<i64: 16, 32>}]} {
    %c0 = arith.constant 0 : index
    %c0_0 = arith.constant 0 : index
    %0 = vector.load %arg1[%c0, %c0_0] : memref<16x32xf32, #tpu.memory_space<vmem>>, vector<16x32xf32>
    %1 = math.absf %0 : vector<16x32xf32>
    %2 = arith.cmpf one, %1, %1 : vector<16x32xf32>
    %cst = arith.constant 0x7F800000 : f32
    %3 = vector.broadcast %cst : f32 to vector<16x32xf32>
    %4 = arith.select %2, %3, %1 : vector<16x32xi1>, vector<16x32xf32>
    %5 = tpu.iota {dimensions = array<i32: 1>} : vector<16x32xi32>
    %c0_i32 = arith.constant 0 : i32
    %6 = vector.broadcast %c0_i32 : i32 to vector<16x32xi32>
    %7 = arith.cmpi slt, %5, %6 : vector<16x32xi32>
    %cst_1 = arith.constant 0xFF800000 : f32
    %8 = vector.broadcast %cst_1 : f32 to vector<16x32xf32>
    %9 = arith.select %7, %8, %4 : vector<16x32xi1>, vector<16x32xf32>
    %cst_2 = arith.constant dense<0xFF800000> : vector<16xf32>
    %10 = vector.multi_reduction <maximumf>, %9, %cst_2 [1] : vector<16x32xf32> to vector<16xf32>
    %11 = vector.shape_cast %10 : vector<16xf32> to vector<16x1xf32>
    %12 = vector.broadcast %11 : vector<16x1xf32> to vector<16x32xf32>
    %13 = arith.cmpf oeq, %9, %12 : vector<16x32xf32>
    %c32_i32 = arith.constant 32 : i32
    %14 = vector.broadcast %c32_i32 : i32 to vector<16x32xi32>
    %15 = arith.select %13, %5, %14 : vector<16x32xi1>, vector<16x32xi32>
    %cst_3 = arith.constant dense<2147483647> : vector<16xi32>
    %16 = vector.multi_reduction <minsi>, %15, %cst_3 [1] : vector<16x32xi32> to vector<16xi32>
    %17 = vector.shape_cast %16 : vector<16xi32> to vector<16x1xi32>
    %18 = vector.broadcast %17 : vector<16x1xi32> to vector<16x32xi32>
    %19 = arith.cmpi eq, %5, %18 : vector<16x32xi32>
    %20 = arith.ori %7, %19 : vector<16x32xi1>
    %cst_4 = arith.constant 0xFF800000 : f32
    %21 = vector.broadcast %cst_4 : f32 to vector<16x32xf32>
    %22 = arith.select %20, %21, %4 : vector<16x32xi1>, vector<16x32xf32>
    %cst_5 = arith.constant dense<0xFF800000> : vector<16xf32>
    %23 = vector.multi_reduction <maximumf>, %22, %cst_5 [1] : vector<16x32xf32> to vector<16xf32>
    %24 = vector.shape_cast %23 : vector<16xf32> to vector<16x1xf32>
    %25 = vector.broadcast %24 : vector<16x1xf32> to vector<16x32xf32>
    %26 = arith.cmpf oeq, %22, %25 : vector<16x32xf32>
    %c32_i32_6 = arith.constant 32 : i32
    %27 = vector.broadcast %c32_i32_6 : i32 to vector<16x32xi32>
    %28 = arith.select %26, %5, %27 : vector<16x32xi1>, vector<16x32xi32>
    %cst_7 = arith.constant dense<2147483647> : vector<16xi32>
    %29 = vector.multi_reduction <minsi>, %28, %cst_7 [1] : vector<16x32xi32> to vector<16xi32>
    %30 = vector.shape_cast %29 : vector<16xi32> to vector<16x1xi32>
    %31 = vector.broadcast %30 : vector<16x1xi32> to vector<16x32xi32>
    %32 = arith.cmpi eq, %5, %31 : vector<16x32xi32>
    %33 = arith.ori %20, %32 : vector<16x32xi1>
    %cst_8 = arith.constant 0xFF800000 : f32
    %34 = vector.broadcast %cst_8 : f32 to vector<16x32xf32>
    %35 = arith.select %33, %34, %4 : vector<16x32xi1>, vector<16x32xf32>
    %cst_9 = arith.constant dense<0xFF800000> : vector<16xf32>
    %36 = vector.multi_reduction <maximumf>, %35, %cst_9 [1] : vector<16x32xf32> to vector<16xf32>
    %37 = vector.shape_cast %36 : vector<16xf32> to vector<16x1xf32>
    %38 = vector.broadcast %37 : vector<16x1xf32> to vector<16x32xf32>
    %39 = arith.cmpf oeq, %35, %38 : vector<16x32xf32>
    %c32_i32_10 = arith.constant 32 : i32
    %40 = vector.broadcast %c32_i32_10 : i32 to vector<16x32xi32>
    %41 = arith.select %39, %5, %40 : vector<16x32xi1>, vector<16x32xi32>
    %cst_11 = arith.constant dense<2147483647> : vector<16xi32>
    %42 = vector.multi_reduction <minsi>, %41, %cst_11 [1] : vector<16x32xi32> to vector<16xi32>
    %43 = vector.shape_cast %42 : vector<16xi32> to vector<16x1xi32>
    %44 = vector.broadcast %43 : vector<16x1xi32> to vector<16x32xi32>
    %45 = arith.cmpi eq, %5, %44 : vector<16x32xi32>
    %46 = arith.ori %33, %45 : vector<16x32xi1>
    %cst_12 = arith.constant 0xFF800000 : f32
    %47 = vector.broadcast %cst_12 : f32 to vector<16x32xf32>
    %48 = arith.select %46, %47, %4 : vector<16x32xi1>, vector<16x32xf32>
    %cst_13 = arith.constant dense<0xFF800000> : vector<16xf32>
    %49 = vector.multi_reduction <maximumf>, %48, %cst_13 [1] : vector<16x32xf32> to vector<16xf32>
    %50 = vector.shape_cast %49 : vector<16xf32> to vector<16x1xf32>
    %51 = vector.broadcast %50 : vector<16x1xf32> to vector<16x32xf32>
    %52 = arith.cmpf oeq, %48, %51 : vector<16x32xf32>
    %c32_i32_14 = arith.constant 32 : i32
    %53 = vector.broadcast %c32_i32_14 : i32 to vector<16x32xi32>
    %54 = arith.select %52, %5, %53 : vector<16x32xi1>, vector<16x32xi32>
    %cst_15 = arith.constant dense<2147483647> : vector<16xi32>
    %55 = vector.multi_reduction <minsi>, %54, %cst_15 [1] : vector<16x32xi32> to vector<16xi32>
    %56 = vector.shape_cast %55 : vector<16xi32> to vector<16x1xi32>
    %57 = vector.broadcast %56 : vector<16x1xi32> to vector<16x32xi32>
    %58 = arith.cmpi eq, %5, %57 : vector<16x32xi32>
    %59 = arith.ori %46, %58 : vector<16x32xi1>
    %cst_16 = arith.constant 0.000000e+00 : f32
    %60 = vector.broadcast %cst_16 : f32 to vector<16x32xf32>
    %61 = arith.select %59, %0, %60 : vector<16x32xi1>, vector<16x32xf32>
    %c0_17 = arith.constant 0 : index
    %c0_18 = arith.constant 0 : index
    %62 = vector.load %arg2[%c0_17, %c0_18] : memref<16x32xf32, #tpu.memory_space<vmem>>, vector<16x32xf32>
    tpu.vector_store %arg2[%c0_17, %c0_18], %61 {strides = array<i32>} : memref<16x32xf32, #tpu.memory_space<vmem>>, vector<16x32xf32>,
    return
  }
  func.func @transform_0(%arg0: i32) -> (i32, i32) {
    %c0_i32 = arith.constant 0 : i32
    %c0_i32_0 = arith.constant 0 : i32
    return %arg0, %c0_i32 : i32, i32
  }
  func.func @transform_1(%arg0: i32) -> (i32, i32) {
    %c0_i32 = arith.constant 0 : i32
    %c0_i32_0 = arith.constant 0 : i32
    return %arg0, %c0_i32 : i32, i32
  }
}

</mosaic_0001>

<bundles_post_ra>
// kernel: tpu_custom_call.1
= control target key start
LH: loop header
LB: loop body
LE: loop exit
PB: predicated region body
PF: predicated region fallthrough
CT: control target
= control target key end

     0   :  { %6 = vsyncpa [#allocation3], 0  ;;  %s434_s0 = inlined_call_operand.hbm [shape: f32[16,32], index: 0, kind: input, shape index: {}]   ;;  %s435_s1 = inlined_call_operand.hbm [shape: f32[16,32], index: 1, kind: output, shape index: {}]  }
   0x1   :  { %7 = vsyncpa [#allocation4], 0  ;;  %s292_s6 = smov [#allocation2]   ;;  %s244_s10 = scalar_lea.hbm %s434_s0, 256 }
   0x2   :  { %s13_s7 = sshll.u32 %s292_s6, 4  ;;  %p245_p0 = scmp.ne.s32.totalorder %s434_s0, %s244_s10  ;;  %s14_s7 = int_to_ptr.vmem [resolvable:$true] %s13_s7 }
   0x3   :  { %p248_p1 = scmp.lt.u32.totalorder %s244_s10, %s434_s0 }
   0x5   :  { %p250_p2 = pnand %p248_p1, %p245_p0 }
   0x7   :  { %253 = shalt.err (!%p250_p2)
}
   0x8   :  { %s254_s15 = scalar_lea.vmem %s14_s7, 256  ;;  %p259_p4 = scmp.lt.s32.totalorder %s14_s7, %s14_s7 }
   0x9   :  { %p255_p3 = scmp.ne.s32.totalorder %s14_s7, %s254_s15  ;;  %p260_p5 = scmp.lt.s32.totalorder %s254_s15, %s254_s15 }
   0xb   :  { %p261_p6 = por %p260_p5, %p259_p4 }
   0xd   :  { %p262_p7 = pnand %p261_p6, %p255_p3 }
   0xf   :  { %265 = shalt.err (!%p262_p7)
}
  0x10   :  { %s293_s16 = smov 128   ;;  %s294_s17 = smov 8  }
  0x11   :  { %19 = dma.hbm_to_vmem [thread:$0]  %s434_s0, 256, %s14_s7, [#allocation3], %s293_s16, %s293_s16, %s294_s17  }
  0x12   :  { %288 = dma.done.wait [#allocation3], 256  }
  0x13   :  { %289 = vsyncadd [#allocation3], 4294967040  ;;  %v321_v0 = vld [vmem:[#allocation2] sm:$0xff]  ;;  %v323_v1 = vld [vmem:[#allocation2 + $0x8] sm:$0xff]  ;;  %vm36_vm0 = vcmask 261120   ;;  %v31_v8 = vlaneseq  ;;  %s295_s0 = smov [#allocation5]  }
  0x14   :  { %v25_v2 = vand.u32 2147483647, %v321_v0  ;;  %v26_v3 = vand.u32 2147483647, %v323_v1  ;;  %s228_s20 = sshll.u32 %s295_s0, 4  ;;  %s229_s20 = int_to_ptr.vmem [resolvable:$true] %s228_s20 }
  0x15   :  { %v335_v9 = vand.u32 127, %v31_v8  ;;  %s266_s21 = scalar_lea.vmem %s229_s20, 256  ;;  %p271_p9 = scmp.lt.s32.totalorder %s229_s20, %s229_s20 }
  0x16   :  { %vm27_vm1 = vcmp.ne.f32.partialorder %v25_v2, %v25_v2  ;;  %vm28_vm2 = vcmp.ne.f32.partialorder %v26_v3, %v26_v3  ;;  %p267_p8 = scmp.ne.s32.totalorder %s229_s20, %s266_s21  ;;  %p272_p10 = scmp.lt.s32.totalorder %s266_s21, %s266_s21 }
  0x17   :  { %v327_v4 = vsel %vm27_vm1, inf, %v25_v2  ;;  %v329_v5 = vsel %vm28_vm2, inf, %v26_v3 }
  0x18   :  { %v37_v6 = vsel %vm36_vm0, %v327_v4, -inf  ;;  %v40_v7 = vsel %vm36_vm0, %v329_v5, -inf  ;;  %p273_p11 = por %p272_p10, %p271_p9 }
  0x19   :  { %38 = vmax.xlane.f32.xlu0 %v37_v6 }
  0x1a   :  { %p274_p12 = pnand %p273_p11, %p267_p8 }
  0x1d   :  { %41 = vmax.xlane.f32.xlu0 %v40_v7 }
  0xa6   :  { %v39_v10 = vpop.xlane.xlu0 %38 }
  0xa7   :  { %vm43_vm3 = vcmp.eq.f32.partialorder %v327_v4, %v39_v10 }
  0xa8   :  { %v45_v11 = vsel %vm43_vm3, %v335_v9, 32 }
  0xa9   :  { %v47_v12 = vsel %vm36_vm0, %v45_v11, 2147483647 }
  0xaa   :  { %v42_v13 = vpop.xlane.xlu0 %41  ;;  %v49_v14 = vshra.s32 %v47_v12, 16  ;;  %v48_v20 = vand.u32 65535, %v47_v12 }
  0xab   :  { %vm44_vm4 = vcmp.eq.f32.partialorder %v329_v5, %v42_v13 }
  0xac   :  { %v46_v15 = vsel %vm44_vm4, %v335_v9, 32  ;;  %v51_v16 = vcvt.s32.f32 %v49_v14  ;;  %v50_v22 = vcvt.s32.f32 %v48_v20 }
  0xad   :  { %v62_v17 = vsel %vm36_vm0, %v46_v15, 2147483647 }
  0xae   :  { %52 = vmin.xlane.f32.xlu1 %v51_v16  ;;  %v64_v18 = vshra.s32 %v62_v17, 16  ;;  %v63_v23 = vand.u32 65535, %v62_v17 }
  0xb0   :  { %v66_v19 = vcvt.s32.f32 %v64_v18  ;;  %v65_v26 = vcvt.s32.f32 %v63_v23 }
  0xb2   :  { %67 = vmin.xlane.f32.xlu1 %v66_v19 }
 0x13b   :  { %v53_v21 = vpop.xlane.xlu1 %52 }
 0x13c   :  { %vm54_vm5 = vcmp.eq.f32.partialorder %v51_v16, %v53_v21  ;;  %v59_v28 = vcvt.f32.s32 %v53_v21 }
 0x13d   :  { %v55_v24 = vsel %vm54_vm5, %v50_v22, inf }
 0x13e   :  { %56 = vmin.xlane.f32.xlu0 %v55_v24  ;;  %v60_v30 = vshll.u32 %v59_v28, 16 }
 0x13f   :  { %v68_v25 = vpop.xlane.xlu1 %67 }
 0x140   :  { %vm69_vm6 = vcmp.eq.f32.partialorder %v66_v19, %v68_v25  ;;  %v74_v31 = vcvt.f32.s32 %v68_v25 }
 0x141   :  { %v70_v27 = vsel %vm69_vm6, %v65_v26, inf }
 0x142   :  { %71 = vmin.xlane.f32.xlu1 %v70_v27  ;;  %v75_v35 = vshll.u32 %v74_v31, 16 }
 0x1cb   :  { %v57_v29 = vpop.xlane.xlu0 %56 }
 0x1cc   :  { %v58_v32 = vcvt.f32.s32 %v57_v29 }
 0x1ce   :  { %v61_v33 = vadd.s32 %v60_v30, %v58_v32 }
 0x1cf   :  { %v72_v34 = vpop.xlane.xlu1 %71 }
 0x1d0   :  { %v73_v36 = vcvt.f32.s32 %v72_v34  ;;  %vm77_vm7 = vcmp.eq.s32.totalorder %v335_v9, %v61_v33 }
 0x1d1   :  { %v81_v37 = vsel %vm77_vm7, -inf, %v327_v4 }
 0x1d2   :  { %v76_v38 = vadd.s32 %v75_v35, %v73_v36  ;;  %v83_v39 = vsel %vm36_vm0, %v81_v37, -inf }
 0x1d3   :  { %84 = vmax.xlane.f32.xlu0 %v83_v39 }
 0x1d4   :  { %vm78_vm8 = vcmp.eq.s32.totalorder %v335_v9, %v76_v38 }
 0x1d5   :  { %v82_v40 = vsel %vm78_vm8, -inf, %v329_v5 }
 0x1d6   :  { %v86_v41 = vsel %vm36_vm0, %v82_v40, -inf }
 0x1d7   :  { %87 = vmax.xlane.f32.xlu1 %v86_v41 }
 0x260   :  { %v85_v42 = vpop.xlane.xlu0 %84 }
 0x261   :  { %vm89_vm9 = vcmp.eq.f32.partialorder %v81_v37, %v85_v42 }
 0x262   :  { %v91_v43 = vsel %vm89_vm9, %v335_v9, 32 }
 0x263   :  { %v93_v44 = vsel %vm36_vm0, %v91_v43, 2147483647 }
 0x264   :  { %v88_v45 = vpop.xlane.xlu1 %87  ;;  %v95_v46 = vshra.s32 %v93_v44, 16  ;;  %v94_v52 = vand.u32 65535, %v93_v44 }
 0x265   :  { %vm90_vm10 = vcmp.eq.f32.partialorder %v82_v40, %v88_v45 }
 0x266   :  { %v92_v47 = vsel %vm90_vm10, %v335_v9, 32  ;;  %v97_v48 = vcvt.s32.f32 %v95_v46  ;;  %v96_v54 = vcvt.s32.f32 %v94_v52 }
 0x267   :  { %v108_v49 = vsel %vm36_vm0, %v92_v47, 2147483647 }
 0x268   :  { %98 = vmin.xlane.f32.xlu0 %v97_v48  ;;  %v110_v50 = vshra.s32 %v108_v49, 16  ;;  %v109_v55 = vand.u32 65535, %v108_v49 }
 0x26a   :  { %v112_v51 = vcvt.s32.f32 %v110_v50  ;;  %v111_v58 = vcvt.s32.f32 %v109_v55 }
 0x26c   :  { %113 = vmin.xlane.f32.xlu1 %v112_v51 }
 0x2f5   :  { %v99_v53 = vpop.xlane.xlu0 %98 }
 0x2f6   :  { %vm100_vm11 = vcmp.eq.f32.partialorder %v97_v48, %v99_v53  ;;  %v105_v60 = vcvt.f32.s32 %v99_v53 }
 0x2f7   :  { %v101_v56 = vsel %vm100_vm11, %v96_v54, inf }
 0x2f8   :  { %102 = vmin.xlane.f32.xlu0 %v101_v56  ;;  %v106_v62 = vshll.u32 %v105_v60, 16 }
 0x2f9   :  { %v114_v57 = vpop.xlane.xlu1 %113 }
 0x2fa   :  { %vm115_vm12 = vcmp.eq.f32.partialorder %v112_v51, %v114_v57  ;;  %v120_v63 = vcvt.f32.s32 %v114_v57 }
 0x2fb   :  { %v116_v59 = vsel %vm115_vm12, %v111_v58, inf }
 0x2fc   :  { %117 = vmin.xlane.f32.xlu1 %v116_v59  ;;  %v121_v7 = vshll.u32 %v120_v63, 16 }
 0x385   :  { %v103_v61 = vpop.xlane.xlu0 %102 }
 0x386   :  { %v104_v2 = vcvt.f32.s32 %v103_v61 }
 0x388   :  { %v107_v3 = vadd.s32 %v106_v62, %v104_v2 }
 0x389   :  { %v118_v6 = vpop.xlane.xlu1 %117 }
 0x38a   :  { %v119_v8 = vcvt.f32.s32 %v118_v6  ;;  %vm123_vm13 = vcmp.eq.s32.totalorder %v335_v9, %v107_v3 }
 0x38b   :  { %vm360_vm14 = vmor %vm77_vm7, %vm123_vm13 }
 0x38c   :  { %v122_v11 = vadd.s32 %v121_v7, %v119_v8  ;;  %v127_v12 = vsel %vm360_vm14, -inf, %v327_v4 }
 0x38d   :  { %v129_v13 = vsel %vm36_vm0, %v127_v12, -inf }
 0x38e   :  { %130 = vmax.xlane.f32.xlu0 %v129_v13  ;;  %vm124_vm15 = vcmp.eq.s32.totalorder %v335_v9, %v122_v11 }
 0x38f   :  { %vm371_vm1 = vmor %vm78_vm8, %vm124_vm15 }
 0x390   :  { %v128_v15 = vsel %vm371_vm1, -inf, %v329_v5 }
 0x391   :  { %v132_v16 = vsel %vm36_vm0, %v128_v15, -inf }
 0x392   :  { %133 = vmax.xlane.f32.xlu1 %v132_v16 }
 0x41b   :  { %v131_v17 = vpop.xlane.xlu0 %130 }
 0x41c   :  { %vm135_vm2 = vcmp.eq.f32.partialorder %v127_v12, %v131_v17 }
 0x41d   :  { %v137_v18 = vsel %vm135_vm2, %v335_v9, 32 }
 0x41e   :  { %v139_v19 = vsel %vm36_vm0, %v137_v18, 2147483647 }
 0x41f   :  { %v134_v20 = vpop.xlane.xlu1 %133  ;;  %v141_v21 = vshra.s32 %v139_v19, 16  ;;  %v140_v27 = vand.u32 65535, %v139_v19 }
 0x420   :  { %vm136_vm3 = vcmp.eq.f32.partialorder %v128_v15, %v134_v20 }
 0x421   :  { %v138_v22 = vsel %vm136_vm3, %v335_v9, 32  ;;  %v143_v23 = vcvt.s32.f32 %v141_v21  ;;  %v142_v29 = vcvt.s32.f32 %v140_v27 }
 0x422   :  { %v154_v24 = vsel %vm36_vm0, %v138_v22, 2147483647 }
 0x423   :  { %144 = vmin.xlane.f32.xlu0 %v143_v23  ;;  %v156_v25 = vshra.s32 %v154_v24, 16  ;;  %v155_v30 = vand.u32 65535, %v154_v24 }
 0x425   :  { %v158_v26 = vcvt.s32.f32 %v156_v25  ;;  %v157_v33 = vcvt.s32.f32 %v155_v30 }
 0x427   :  { %159 = vmin.xlane.f32.xlu1 %v158_v26 }
 0x4b0   :  { %v145_v28 = vpop.xlane.xlu0 %144 }
 0x4b1   :  { %vm146_vm4 = vcmp.eq.f32.partialorder %v143_v23, %v145_v28  ;;  %v151_v35 = vcvt.f32.s32 %v145_v28 }
 0x4b2   :  { %v147_v31 = vsel %vm146_vm4, %v142_v29, inf }
 0x4b3   :  { %148 = vmin.xlane.f32.xlu0 %v147_v31  ;;  %v152_v37 = vshll.u32 %v151_v35, 16 }
 0x4b4   :  { %v160_v32 = vpop.xlane.xlu1 %159 }
 0x4b5   :  { %vm161_vm5 = vcmp.eq.f32.partialorder %v158_v26, %v160_v32  ;;  %v166_v38 = vcvt.f32.s32 %v160_v32 }
 0x4b6   :  { %v162_v34 = vsel %vm161_vm5, %v157_v33, inf }
 0x4b7   :  { %163 = vmin.xlane.f32.xlu1 %v162_v34  ;;  %v167_v42 = vshll.u32 %v166_v38, 16 }
 0x540   :  { %v149_v36 = vpop.xlane.xlu0 %148 }
 0x541   :  { %v150_v39 = vcvt.f32.s32 %v149_v36 }
 0x543   :  { %v153_v40 = vadd.s32 %v152_v37, %v150_v39 }
 0x544   :  { %v164_v41 = vpop.xlane.xlu1 %163 }
 0x545   :  { %v165_v43 = vcvt.f32.s32 %v164_v41  ;;  %vm169_vm6 = vcmp.eq.s32.totalorder %v335_v9, %v153_v40 }
 0x546   :  { %vm386_vm7 = vmor %vm360_vm14, %vm169_vm6 }
 0x547   :  { %v168_v45 = vadd.s32 %v167_v42, %v165_v43  ;;  %v173_v46 = vsel %vm386_vm7, -inf, %v327_v4 }
 0x548   :  { %v175_v47 = vsel %vm36_vm0, %v173_v46, -inf }
 0x549   :  { %176 = vmax.xlane.f32.xlu0 %v175_v47  ;;  %vm170_vm8 = vcmp.eq.s32.totalorder %v335_v9, %v168_v45 }
 0x54a   :  { %vm397_vm9 = vmor %vm371_vm1, %vm170_vm8 }
 0x54b   :  { %v174_v49 = vsel %vm397_vm9, -inf, %v329_v5 }
 0x54c   :  { %v178_v50 = vsel %vm36_vm0, %v174_v49, -inf }
 0x54d   :  { %179 = vmax.xlane.f32.xlu1 %v178_v50 }
 0x5d6   :  { %v177_v51 = vpop.xlane.xlu0 %176 }
 0x5d7   :  { %vm181_vm10 = vcmp.eq.f32.partialorder %v173_v46, %v177_v51 }
 0x5d8   :  { %v183_v4 = vsel %vm181_vm10, %v335_v9, 32 }
 0x5d9   :  { %v185_v52 = vsel %vm36_vm0, %v183_v4, 2147483647 }
 0x5da   :  { %v180_v53 = vpop.xlane.xlu1 %179  ;;  %v187_v54 = vshra.s32 %v185_v52, 16  ;;  %v186_v59 = vand.u32 65535, %v185_v52 }
 0x5db   :  { %vm182_vm11 = vcmp.eq.f32.partialorder %v174_v49, %v180_v53 }
 0x5dc   :  { %v184_v55 = vsel %vm182_vm11, %v335_v9, 32  ;;  %v189_v56 = vcvt.s32.f32 %v187_v54  ;;  %v188_v61 = vcvt.s32.f32 %v186_v59 }
 0x5dd   :  { %v200_v57 = vsel %vm36_vm0, %v184_v55, 2147483647 }
 0x5de   :  { %190 = vmin.xlane.f32.xlu0 %v189_v56  ;;  %v202_v58 = vshra.s32 %v200_v57, 16  ;;  %v201_v62 = vand.u32 65535, %v200_v57 }
 0x5e0   :  { %v204_v5 = vcvt.s32.f32 %v202_v58  ;;  %v203_v3 = vcvt.s32.f32 %v201_v62 }
 0x5e2   :  { %205 = vmin.xlane.f32.xlu1 %v204_v5 }
 0x66b   :  { %v191_v60 = vpop.xlane.xlu0 %190 }
 0x66c   :  { %vm192_vm12 = vcmp.eq.f32.partialorder %v189_v56, %v191_v60  ;;  %v197_v7 = vcvt.f32.s32 %v191_v60 }
 0x66d   :  { %v193_v63 = vsel %vm192_vm12, %v188_v61, inf }
 0x66e   :  { %194 = vmin.xlane.f32.xlu0 %v193_v63  ;;  %v198_v10 = vshll.u32 %v197_v7, 16 }
 0x66f   :  { %v206_v2 = vpop.xlane.xlu1 %205 }
 0x670   :  { %vm207_vm13 = vcmp.eq.f32.partialorder %v204_v5, %v206_v2  ;;  %v212_v11 = vcvt.f32.s32 %v206_v2 }
 0x671   :  { %v208_v6 = vsel %vm207_vm13, %v203_v3, inf }
 0x672   :  { %209 = vmin.xlane.f32.xlu1 %v208_v6  ;;  %v213_v15 = vshll.u32 %v212_v11, 16 }
 0x6fb   :  { %v195_v8 = vpop.xlane.xlu0 %194 }
 0x6fc   :  { %v196_v12 = vcvt.f32.s32 %v195_v8 }
 0x6fe   :  { %v199_v13 = vadd.s32 %v198_v10, %v196_v12 }
 0x6ff   :  { %v210_v14 = vpop.xlane.xlu1 %209 }
 0x700   :  { %vm215_vm14 = vcmp.eq.s32.totalorder %v335_v9, %v199_v13  ;;  %v211_v16 = vcvt.f32.s32 %v210_v14 }
 0x701   :  { %vm217_vm15 = vmor %vm386_vm7, %vm215_vm14 }
 0x702   :  { %v214_v17 = vadd.s32 %v213_v15, %v211_v16  ;;  %v219_v18 = vsel %vm217_vm15, %v321_v0, 0.0 }
 0x703   :  { %221 = vst.msk [vmem:[#allocation5] sm:$0xff] %vm36_vm0, %v219_v18 }
 0x704   :  { %vm216_vm1 = vcmp.eq.s32.totalorder %v335_v9, %v214_v17 }
 0x705   :  { %vm218_vm2 = vmor %vm397_vm9, %vm216_vm1 }
 0x706   :  { %v220_v19 = vsel %vm218_vm2, %v323_v1, 0.0 }
 0x707   :  { %222 = vst.msk [vmem:[#allocation5 + $0x8] sm:$0xff] %vm36_vm0, %v220_v19 }
 0x708   :  { %277 = shalt.err (!%p274_p12)
}
 0x709   :  { %s278_s24 = scalar_lea.hbm %s435_s1, 256 }
 0x70a   :  { %p279_p13 = scmp.ne.s32.totalorder %s435_s1, %s278_s24  ;;  %p282_p0 = scmp.lt.u32.totalorder %s278_s24, %s435_s1 }
 0x70c   :  { %p284_p1 = pnand %p282_p0, %p279_p13 }
 0x70e   :  { %287 = shalt.err (!%p284_p1)
}
 0x70f   :  { %234 = dma.vmem_to_hbm [thread:$0]  %s229_s20, 256, %s435_s1, [#allocation4], %s293_s16, %s293_s16, %s294_s17  }
 0x710   :  { %290 = dma.done.wait [#allocation4], 256  }
 0x711   :  { %291 = vsyncadd [#allocation4], 4294967040 }
 0x712   :  { %238 = vsyncpa [#allocation3], 1 }
 0x713   :  { %239 = vsyncpa [#allocation4], 1 }

</bundles_post_ra>
